<compile_context>
chip_gen: v5e
topology: v5e:2x2
jax: 0.10.0
libtpu: 0.0.40
codegen_flags: <defaults>
</compile_context>

<pallas_src>
import functools
import math

import jax
import jax.numpy as jnp
from jax.experimental import pallas as pl
from jax.experimental.pallas import tpu as pltpu


def _vmem_limit_bytes():
    """Generation-aware scoped-VMEM limit."""
    try:
        cap = pltpu.get_tpu_info().vmem_capacity_bytes
    except Exception:
        return 32 * 1024 * 1024
    if cap >= 128 * 1024 * 1024:      # v5e / v6e: 128 MiB physical
        return 64 * 1024 * 1024
    return 40 * 1024 * 1024           # v7x: 64 MiB physical


def _bce_kernel(pred_ref, label_ref, out_ref, *, ignore_label, f_rows,
                chunk_rows, sub_rows, n_sub_full, tail_rows, need_row_mask):
    """Processes one (bn, chunk_rows, 128) tile.

    Grid: (batch_blocks, feature_chunks). The (bn, 1, 128) output block is resident
    across the feature-chunk (reduction) axis and accumulates lane-wise partial sums.
    The chunk is consumed in sub_rows-row slabs so VMEM temporaries stay small even
    for large DMA tiles.
    """
    j = pl.program_id(1)

    @pl.when(j == 0)
    def _():
        out_ref[...] = jnp.zeros_like(out_ref)

    bn = pred_ref.shape[0]
    chunk_base = j * chunk_rows

    def slab_loss_sum(row_off, rows):
        pred = pred_ref[:, pl.ds(row_off, rows), :].astype(jnp.float32)
        lab = label_ref[:, pl.ds(row_off, rows), :].astype(jnp.float32)

        # sample_weight = (label != ignore_label); padded / out-of-range rows dropped.
        keep = lab != ignore_label
        if need_row_mask:
            rid = chunk_base + row_off + jax.lax.broadcasted_iota(
                jnp.int32, pred.shape, 1)
            keep = keep & (rid < f_rows)

        # loss = relu(pred) - pred*label + softplus(-|pred|)
        #   softplus(-|x|) = log1p(exp(-|x|))   (safe: exponent <= 0)
        loss = (jnp.maximum(pred, 0.0)
                - pred * lab
                + jnp.log1p(jnp.exp(-jnp.abs(pred))))
        # Select (not multiply): exact zero for dropped entries and NaN-safe for the
        # unspecified contents of partial boundary blocks.
        loss = jnp.where(keep, loss, 0.0)

        # Sublane reduce; lanes stay dense.
        return jnp.sum(loss, axis=1)                     # (bn, 128)

    acc = jnp.zeros((bn, 128), jnp.float32)
    if n_sub_full > 0:
        def body(t, a):
            off = pl.multiple_of(t * sub_rows, sub_rows)
            return a + slab_loss_sum(off, sub_rows)
        acc = jax.lax.fori_loop(0, n_sub_full, body, acc, unroll=True)
    if tail_rows > 0:
        acc = acc + slab_loss_sum(n_sub_full * sub_rows, tail_rows)

    out_ref[...] += acc[:, None, :]


def sigmoid_bce_loss(pred, label, *, from_sigmoid=False, weight=1.0,
                     ignore_label=-1, max_chunk_rows=4096, sub_rows=512):
    """Per-batch-element mean BCE-with-logits loss, shape (N,)."""
    if from_sigmoid:
        # TODO(synk): from_sigmoid=True branch not needed for the default module config.
        raise NotImplementedError("from_sigmoid=True path not implemented")
    if hasattr(weight, "shape") and getattr(weight, "size", 1) != 1:
        # TODO(synk): elementwise tensor `weight` not supported; scalar only.
        raise NotImplementedError("tensor `weight` not supported; pass a scalar")
    weight = float(weight)

    n = pred.shape[0]
    f = math.prod(pred.shape[1:])

    pred2d = pred.reshape(n, f)
    label2d = label.reshape(n, f)        # matches label.view(pred.size())

    # Lane-dense layout: pad F only up to the next multiple of 128 (usually a no-op).
    # Labels padded with ignore_label so padded lanes contribute exactly zero.
    f_pad = -(-f // 128) * 128
    if f_pad != f:
        pred2d = jnp.pad(pred2d, ((0, 0), (0, f_pad - f)))
        label2d = jnp.pad(label2d, ((0, 0), (0, f_pad - f)),
                          constant_values=float(ignore_label))
    f_rows = f_pad // 128

    pred3d = pred2d.reshape(n, f_rows, 128)
    label3d = label2d.reshape(n, f_rows, 128)     # native dtype, no extra cast pass

    # Balanced chunking along the row (reduction) axis.
    sub_rows = max(8, (int(sub_rows) // 8) * 8)
    max_chunk_rows = max(sub_rows, int(max_chunk_rows))
    n_chunks = -(-f_rows // max_chunk_rows)
    if n_chunks == 1:
        chunk_rows = f_rows                        # full dim: always a legal block dim
    else:
        rows_per_chunk = -(-f_rows // n_chunks)
        chunk_rows = (-(-rows_per_chunk // sub_rows)) * sub_rows
        n_chunks = -(-f_rows // chunk_rows)
    n_sub_full, tail_rows = divmod(chunk_rows, sub_rows)
    need_row_mask = (n_chunks * chunk_rows) != f_rows

    # Block several batch rows per step when each row's feature tile is small.
    bn = 1
    if n > 1 and n_chunks == 1:
        target = max(1, max_chunk_rows // max(chunk_rows, 1))
        for d in range(min(n, target), 0, -1):
            if n % d == 0:
                bn = d
                break

    kernel = functools.partial(
        _bce_kernel,
        ignore_label=float(ignore_label),
        f_rows=f_rows,
        chunk_rows=chunk_rows,
        sub_rows=sub_rows,
        n_sub_full=n_sub_full,
        tail_rows=tail_rows,
        need_row_mask=need_row_mask,
    )

    partial_sums = pl.pallas_call(
        kernel,
        out_shape=jax.ShapeDtypeStruct((n, 1, 128), jnp.float32),
        grid_spec=pltpu.PrefetchScalarGridSpec(
            num_scalar_prefetch=0,
            grid=(n // bn, n_chunks),
            in_specs=[
                pl.BlockSpec((bn, chunk_rows, 128), lambda i, j: (i, j, 0)),
                pl.BlockSpec((bn, chunk_rows, 128), lambda i, j: (i, j, 0)),
            ],
            out_specs=pl.BlockSpec((bn, 1, 128), lambda i, j: (i, 0, 0)),
        ),
        compiler_params=pltpu.CompilerParams(
            dimension_semantics=("parallel", "arbitrary"),
            vmem_limit_bytes=_vmem_limit_bytes(),
        ),
    )(pred3d, label3d)

    # Final cross-lane reduction + (scalar weight / mean-over-F) scale: tiny (n x 128).
    return partial_sums[:, 0, :].sum(axis=-1) * (weight / float(f))


def _reference(pred, label, *, weight=1.0, ignore_label=-1):
    """Pure-JAX reference mirroring the PyTorch module."""
    label = label.reshape(pred.shape)
    sw = (label != ignore_label)
    label = jnp.where(sw, label, jnp.zeros_like(label))
    loss = (jnp.maximum(pred, 0.0)
            - pred * label
            + jnp.log1p(jnp.exp(-jnp.abs(pred))))
    loss = weight * (loss * sw.astype(loss.dtype))
    return jnp.mean(loss, axis=tuple(range(1, loss.ndim)))


if __name__ == "__main__":
    key = jax.random.PRNGKey(0)
    k1, k2, k3 = jax.random.split(key, 3)

    N, C, H, W = 2, 4, 16, 16
    pred = jax.random.normal(k1, (N, C, H, W), dtype=jnp.float32) * 3.0
    # binary labels with some ignored (-1) entries
    label = (jax.random.uniform(k2, (N, C, H, W)) > 0.5).astype(jnp.float32)
    ignore_mask = jax.random.uniform(k3, (N, C, H, W)) < 0.1
    label = jnp.where(ignore_mask, jnp.full_like(label, -1.0), label)

    out = sigmoid_bce_loss(pred, label)
    out = jax.block_until_ready(out)

    ref = _reference(pred, label)
    assert out.shape == (N,), out.shape
    assert jnp.allclose(out, ref, atol=1e-5, rtol=1e-5), (out, ref)

    print("KERNEL_OK")
</pallas_src>

<mosaic_0001>
module attributes {stable_mosaic.version = 11 : i64} {
  func.func @_bce_kernel(%arg0: i32, %arg1: i32, %arg2: memref<2x8x128xf32, #tpu.memory_space<vmem>>, %arg3: memref<2x8x128xf32, #tpu.memory_space<vmem>>, %arg4: memref<2x1x128xf32, #tpu.memory_space<vmem>>) attributes {dimension_semantics = [#tpu.dimension_semantics<parallel>, #tpu.dimension_semantics<arbitrary>], iteration_bounds = array<i64: 1, 1>, scalar_prefetch = 0 : i64, scratch_operands = 0 : i64, tpu.core_type = #tpu.core_type<tc>, window_params = [{transform_indices = @transform_0, window_bounds = array<i64: 2, 8, 128>}, {transform_indices = @transform_1, window_bounds = array<i64: 2, 8, 128>}, {transform_indices = @transform_2, window_bounds = array<i64: 2, 1, 128>}]} {
    %c0_i32 = arith.constant 0 : i32
    %0 = arith.cmpi eq, %arg1, %c0_i32 : i32
    %1 = arith.extui %0 : i1 to i32
    %c0_i32_0 = arith.constant 0 : i32
    %2 = arith.cmpi ne, %1, %c0_i32_0 : i32
    scf.if %2 {
      %cst_17 = arith.constant 0.000000e+00 : f32
      %26 = vector.broadcast %cst_17 : f32 to vector<2x1x128xf32>
      %c0_18 = arith.constant 0 : index
      %c0_19 = arith.constant 0 : index
      %c0_20 = arith.constant 0 : index
      %27 = vector.load %arg4[%c0_18, %c0_19, %c0_20] : memref<2x1x128xf32, #tpu.memory_space<vmem>>, vector<2x1x128xf32>
      tpu.vector_store %arg4[%c0_18, %c0_19, %c0_20], %26 {strides = array<i32>} : memref<2x1x128xf32, #tpu.memory_space<vmem>>, vector<2x1x128xf32>,
    } else {
    }
    %cst = arith.constant 0.000000e+00 : f32
    %3 = vector.broadcast %cst : f32 to vector<2x128xf32>
    %c0 = arith.constant 0 : index
    %c0_1 = arith.constant 0 : index
    %c0_2 = arith.constant 0 : index
    %4 = vector.load %arg2[%c0, %c0_1, %c0_2] : memref<2x8x128xf32, #tpu.memory_space<vmem>>, vector<2x8x128xf32>
    %c0_3 = arith.constant 0 : index
    %c0_4 = arith.constant 0 : index
    %c0_5 = arith.constant 0 : index
    %5 = vector.load %arg3[%c0_3, %c0_4, %c0_5] : memref<2x8x128xf32, #tpu.memory_space<vmem>>, vector<2x8x128xf32>
    %cst_6 = arith.constant -1.000000e+00 : f32
    %6 = vector.broadcast %cst_6 : f32 to vector<2x8x128xf32>
    %7 = arith.cmpf one, %5, %6 : vector<2x8x128xf32>
    %cst_7 = arith.constant 0.000000e+00 : f32
    %8 = vector.broadcast %cst_7 : f32 to vector<2x8x128xf32>
    %9 = arith.maximumf %4, %8 : vector<2x8x128xf32>
    %10 = arith.mulf %4, %5 : vector<2x8x128xf32>
    %11 = arith.subf %9, %10 : vector<2x8x128xf32>
    %12 = math.absf %4 : vector<2x8x128xf32>
    %cst_8 = arith.constant 0.000000e+00 : f32
    %13 = vector.broadcast %cst_8 : f32 to vector<2x8x128xf32>
    %14 = arith.subf %13, %12 : vector<2x8x128xf32>
    %15 = math.exp %14 : vector<2x8x128xf32>
    %16 = math.log1p %15 : vector<2x8x128xf32>
    %17 = arith.addf %11, %16 : vector<2x8x128xf32>
    %cst_9 = arith.constant 0.000000e+00 : f32
    %18 = vector.broadcast %cst_9 : f32 to vector<2x8x128xf32>
    %19 = arith.select %7, %17, %18 : vector<2x8x128xi1>, vector<2x8x128xf32>
    %cst_10 = arith.constant dense<0.000000e+00> : vector<2x128xf32>
    %20 = vector.multi_reduction <add>, %19, %cst_10 [1] : vector<2x8x128xf32> to vector<2x128xf32>
    %21 = arith.addf %3, %20 : vector<2x128xf32>
    %c0_11 = arith.constant 0 : index
    %c0_12 = arith.constant 0 : index
    %c0_13 = arith.constant 0 : index
    %22 = vector.load %arg4[%c0_11, %c0_12, %c0_13] : memref<2x1x128xf32, #tpu.memory_space<vmem>>, vector<2x1x128xf32>
    %23 = vector.shape_cast %21 : vector<2x128xf32> to vector<2x1x128xf32>
    %24 = arith.addf %22, %23 : vector<2x1x128xf32>
    %c0_14 = arith.constant 0 : index
    %c0_15 = arith.constant 0 : index
    %c0_16 = arith.constant 0 : index
    %25 = vector.load %arg4[%c0_14, %c0_15, %c0_16] : memref<2x1x128xf32, #tpu.memory_space<vmem>>, vector<2x1x128xf32>
    tpu.vector_store %arg4[%c0_14, %c0_15, %c0_16], %24 {strides = array<i32>} : memref<2x1x128xf32, #tpu.memory_space<vmem>>, vector<2x1x128xf32>,
    return
  }
  func.func @transform_0(%arg0: i32, %arg1: i32) -> (i32, i32, i32) {
    %c0_i32 = arith.constant 0 : i32
    %c0_i32_0 = arith.constant 0 : i32
    return %arg0, %arg1, %c0_i32 : i32, i32, i32
  }
  func.func @transform_1(%arg0: i32, %arg1: i32) -> (i32, i32, i32) {
    %c0_i32 = arith.constant 0 : i32
    %c0_i32_0 = arith.constant 0 : i32
    return %arg0, %arg1, %c0_i32 : i32, i32, i32
  }
  func.func @transform_2(%arg0: i32, %arg1: i32) -> (i32, i32, i32) {
    %c0_i32 = arith.constant 0 : i32
    %c0_i32_0 = arith.constant 0 : i32
    %c0_i32_1 = arith.constant 0 : i32
    return %arg0, %c0_i32, %c0_i32_0 : i32, i32, i32
  }
}

</mosaic_0001>

<bundles_post_ra>
// kernel: tpu_custom_call.1
= control target key start
LH: loop header
LB: loop body
LE: loop exit
PB: predicated region body
PF: predicated region fallthrough
CT: control target
= control target key end

     0   :  { %7 = vsyncpa [#allocation3], 0  ;;  %s258_s0 = inlined_call_operand.hbm [shape: f32[2,8,128], index: 0, kind: input, shape index: {}]   ;;  %s259_s1 = inlined_call_operand.hbm [shape: f32[2,8,128], index: 1, kind: input, shape index: {}]   ;;  %s260_s2 = inlined_call_operand.hbm [shape: f32[2,1,128], index: 2, kind: output, shape index: {}]  }
   0x1   :  { %8 = vsyncpa [#allocation6], 0 }
   0x2   :  { %9 = vsyncpa [#allocation4], 0  ;;  %s14_s11 = sshll.u32 %s258_s0, 4  ;;  %s226_s12 = smov [#allocation2]   ;;  %s15_s11 = int_to_ptr.hbm [resolvable:$true] %s14_s11 }
   0x3   :  { %s16_s13 = sshll.u32 %s226_s12, 4  ;;  %s27_s16 = sshll.u32 %s259_s1, 4  ;;  %s17_s13 = int_to_ptr.vmem [resolvable:$true] %s16_s13  ;;  %s28_s16 = int_to_ptr.hbm [resolvable:$true] %s27_s16 }
   0x4   :  { %s227_s17 = smov 128   ;;  %s228_s18 = smov 8  }
   0x5   :  { %22 = dma.hbm_to_vmem [thread:$0]  %s15_s11, 256, %s17_s13, [#allocation3], %s227_s17, %s227_s17, %s228_s18  }
   0x6   :  { %s229_s19 = smov [#allocation5]  }
   0x7   :  { %s29_s20 = sshll.u32 %s229_s19, 4  ;;  %s30_s20 = int_to_ptr.vmem [resolvable:$true] %s29_s20 }
   0x8   :  { %35 = dma.hbm_to_vmem [thread:$0]  %s28_s16, 256, %s30_s20, [#allocation6], %s227_s17, %s227_s17, %s228_s18  }
   0x9   :  { %220 = dma.done.wait [#allocation3], 256  }
   0xa   :  { %221 = vsyncadd [#allocation3], 4294967040 }
   0xb   :  { %222 = dma.done.wait [#allocation6], 256  }
   0xc   :  { %223 = vsyncadd [#allocation6], 4294967040  ;;  %v230_v0 = vmov 0.0   ;;  %v50_v1 = vld [vmem:[#allocation2] sm:$0xff]  ;;  %v51_v2 = vld [vmem:[#allocation2 + $0x8] sm:$0xff]  ;;  %s231_s0 = smov [#allocation7]  }
   0xd   :  { %48 = vst [vmem:[#allocation7] sm:$0x1] %v230_v0  ;;  %v62_v3 = vand.u32 2147483647, %v50_v1  ;;  %v63_v4 = vand.u32 2147483647, %v51_v2 }
   0xe   :  { %49 = vst [vmem:[#allocation7 + $0x1] sm:$0x1] %v230_v0  ;;  %v52_v13 = vld [vmem:[#allocation5] sm:$0xff]  ;;  %v53_v16 = vld [vmem:[#allocation5 + $0x8] sm:$0xff]  ;;  %v56_v18 = vmax.f32 %v50_v1, 0.0  ;;  %v57_v22 = vmax.f32 %v51_v2, 0.0 }
   0xf   :  { %v64_v5 = vsub.f32 0.0, %v62_v3  ;;  %v65_v6 = vsub.f32 0.0, %v63_v4  ;;  %v58_v19 = vmul.f32 %v52_v13, %v50_v1  ;;  %v59_v23 = vmul.f32 %v53_v16, %v51_v2  ;;  %s116_s1 = sshll.u32 %s231_s0, 4  ;;  %s118_s23 = sshll.u32 %s260_s2, 4  ;;  %s117_s1 = int_to_ptr.vmem [resolvable:$true] %s116_s1  ;;  %s119_s23 = int_to_ptr.hbm [resolvable:$true] %s118_s23 }
  0x10   :  { %vm54_vm2 = vcmp.ne.f32.partialorder %v52_v13, -1.0  ;;  %vm55_vm3 = vcmp.ne.f32.partialorder %v53_v16, -1.0  ;;  %s232_s24 = smov 16   ;;  %s233_s25 = smov 1  }
  0x11   :  { %v66_v7 = vmul.f32 1.442695, %v64_v5  ;;  %v68_v8 = vmul.f32 1.442695, %v65_v6  ;;  %v60_v27 = vsub.f32 %v56_v18, %v58_v19  ;;  %v61_v31 = vsub.f32 %v57_v22, %v59_v23 }
  0x13   :  { %140 = vpow2.f32 %v66_v7 }
  0x14   :  { %142 = vpow2.f32 %v68_v8  ;;  %v106_v48 = vld [vmem:[#allocation7] sm:$0x1] }
  0x15   :  { %v107_v51 = vld [vmem:[#allocation7 + $0x1] sm:$0x1] }
  0x19   :  { %v141_v9 = vpop.eup %140 }
  0x1a   :  { %v143_v10 = vpop.eup %142  ;;  %v70_v11 = vadd.f32 1.0, %v141_v9  ;;  %v73_v12 = vmul.f32 -0.5, %v141_v9  ;;  %v76_v20 = vand.u32 2147483647, %v141_v9 }
  0x1b   :  { %v79_v14 = vadd.f32 1.0, %v143_v10  ;;  %v82_v15 = vmul.f32 -0.5, %v143_v10  ;;  %v85_v24 = vand.u32 2147483647, %v143_v10 }
  0x1c   :  { %144 = vlog2.f32 %v70_v11  ;;  %v74_v17 = vadd.f32 1.0, %v73_v12  ;;  %vm77_vm0 = vcmp.lt.f32.partialorder %v76_v20, 0.0004427343 }
  0x1d   :  { %146 = vlog2.f32 %v79_v14  ;;  %v83_v21 = vadd.f32 1.0, %v82_v15  ;;  %vm86_vm1 = vcmp.lt.f32.partialorder %v85_v24, 0.0004427343 }
  0x1e   :  { %v75_v25 = vmul.f32 %v141_v9, %v74_v17 }
  0x1f   :  { %v84_v28 = vmul.f32 %v143_v10, %v83_v21 }
  0x22   :  { %v145_v26 = vpop.eup %144 }
  0x23   :  { %v147_v29 = vpop.eup %146  ;;  %v72_v30 = vmul.f32 0.6931472, %v145_v26 }
  0x24   :  { %v81_v32 = vmul.f32 0.6931472, %v147_v29 }
  0x25   :  { %v78_v33 = vsel %vm77_vm0, %v75_v25, %v72_v30 }
  0x26   :  { %v88_v34 = vadd.f32 %v78_v33, %v60_v27  ;;  %v87_v35 = vsel %vm86_vm1, %v84_v28, %v81_v32 }
  0x27   :  { %v89_v36 = vadd.f32 %v87_v35, %v61_v31 }
  0x28   :  { %v90_v37 = vsel %vm54_vm2, %v88_v34, 0.0 }
  0x29   :  { %v92_v38 = vrot.slane %v90_v37, 4  ;;  %v91_v39 = vsel %vm55_vm3, %v89_v36, 0.0 }
  0x2a   :  { %v98_v40 = vrot.slane %v91_v39, 4 }
  0x2b   :  { %v93_v41 = vadd.f32 %v92_v38, %v90_v37 }
  0x2c   :  { %v99_v42 = vadd.f32 %v98_v40, %v91_v39 }
  0x2d   :  { %v94_v43 = vrot.slane %v93_v41, 2 }
  0x2e   :  { %v100_v44 = vrot.slane %v99_v42, 2 }
  0x2f   :  { %v95_v45 = vadd.f32 %v94_v43, %v93_v41 }
  0x30   :  { %v101_v46 = vadd.f32 %v100_v44, %v99_v42 }
  0x31   :  { %v96_v47 = vrot.slane %v95_v45, 1 }
  0x32   :  { %v102_v49 = vrot.slane %v101_v46, 1 }
  0x33   :  { %v97_v50 = vadd.f32 %v96_v47, %v95_v45 }
  0x34   :  { %v103_v52 = vadd.f32 %v102_v49, %v101_v46 }
  0x35   :  { %v108_v53 = vadd.f32 %v106_v48, %v97_v50 }
  0x36   :  { %v109_v54 = vadd.f32 %v107_v51, %v103_v52 }
  0x37   :  { %110 = vst [vmem:[#allocation7] sm:$0x1] %v108_v53 }
  0x38   :  { %111 = vst [vmem:[#allocation7 + $0x1] sm:$0x1] %v109_v54 }
  0x39   :  { %124 = dma.vmem_to_hbm [thread:$0]  %s117_s1, 32, %s119_s23, [#allocation4], %s232_s24, %s232_s24, %s233_s25  }
  0x3a   :  { %224 = dma.done.wait [#allocation4], 32  }
  0x3b   :  { %225 = vsyncadd [#allocation4], 4294967264 }
  0x3c   :  { %129 = vsyncpa [#allocation3], 1 }
  0x3d   :  { %130 = vsyncpa [#allocation6], 1 }
  0x3e   :  { %131 = vsyncpa [#allocation4], 1 }

</bundles_post_ra>
